<compile_context>
chip_gen: v7x
topology: tpu7x:2x2x1
jax: 0.10.0
libtpu: 0.0.40
codegen_flags: <defaults>
</compile_context>

<pallas_src>
import functools

import jax
import jax.numpy as jnp
from jax.experimental import pallas as pl
from jax.experimental.pallas import tpu as pltpu


def _rup(x, m):
    return ((x + m - 1) // m) * m


def _row_decoder_kernel(enc_ref, state_ref, w_ref, s_ref, out_ref, *,
                        O, c_off, approx_recip):
    f32 = jnp.float32
    B, N, H = enc_ref.shape
    cdt = enc_ref.dtype
    SW = state_ref.shape[1]                 # packed-state lane width
    OP = _rup(O, 32)

    enc = enc_ref[...].astype(f32)          # (B, N, H) f32 (VPU math stays f32)
    state = state_ref[...]                  # (B, SW)   f32: [emb | 0 | h0 | c0 | 0]
    scal = s_ref[...]                       # (2, WL)   f32

    w_e = scal[1, 0:H]                                  # attention encoder-half weight
    b_cat = scal[0, :]                                  # b_ih + b_hh (zero-padded to WL)
    b_fc = scal[1, _rup(H, 32):_rup(H, 32) + OP]        # fc bias (zero-padded to OP)

    # ---- attention scores: VPU multiply + lane reduce over H ---------------
    # (hidden-state term + bias are constant along N -> cancel in the softmax)
    scores = jnp.sum(enc * w_e[None, None, :], axis=-1)          # (B, N) f32
    m = jnp.max(scores, axis=-1, keepdims=True)
    p = jnp.exp(scores - m)
    denom = jnp.sum(p, axis=-1, keepdims=True)
    if approx_recip:
        attn = p * pl.reciprocal(denom, approx=True)             # EUP vrcp
    else:
        attn = p / denom                                         # strict f32 parity

    # ---- context vector: VPU broadcast-multiply + N-sublane reduce ----------
    context = jnp.sum(attn[:, :, None] * enc, axis=1)            # (B, H) f32

    # ---- single-step LSTM: two accumulating MXU dots (no lane concat) -------
    gates = (jnp.dot(state.astype(cdt), w_ref[0:SW, :],
                     preferred_element_type=f32)
             + jnp.dot(context.astype(cdt), w_ref[SW:SW + H, :],
                       preferred_element_type=f32)
             + b_cat[None, :])                                   # (B, WL>=4H) f32
    sig = jax.nn.sigmoid(gates)          # one full-vreg EUP pass
    th = jnp.tanh(gates)                 # one full-vreg EUP pass
    i = sig[:, 0 * H:1 * H]
    f = sig[:, 1 * H:2 * H]
    g = th[:, 2 * H:3 * H]
    o = sig[:, 3 * H:4 * H]
    c0 = state[:, c_off:c_off + H]                               # f32, exact
    c1 = f * c0 + i * g
    h1 = o * jnp.tanh(c1)

    # ---- fc_out against zero-padded (H, WL) slab; logits land in lanes 0:O --
    fc = jnp.dot(h1.astype(cdt), w_ref[SW + H:SW + 2 * H, :],
                 preferred_element_type=f32)                     # (B, WL) f32
    logits_pad = fc[:, 0:OP] + b_fc[None, :]                     # (B, OP)

    # ---- one lane-dense, 32-aligned store: [logits | h1 | c1 | attn | 0] ----
    pieces = [logits_pad, h1, c1, attn]
    used = OP + 2 * H + N
    pad = out_ref.shape[1] - used
    if pad > 0:
        pieces.append(jnp.zeros((B, pad), f32))
    out_ref[...] = jnp.concatenate(pieces, axis=-1)


def row_decoder_forward(decoder_input, hidden_state, cell, encoder_outputs,
                        params, *, compute_dtype=jnp.bfloat16):
    """Single decode step of RowDecoder.

    decoder_input: (B, 1) int32; hidden_state / cell: (1, B, H);
    encoder_outputs: (B, K, L, H).  Returns (logits, hidden, cell, attn_weights).
    compute_dtype only controls MXU operands; all accumulation stays f32.
    """
    B, K, L, H = encoder_outputs.shape
    E = params["embedding"].shape[1]
    O = params["fc_w"].shape[0]
    N = K * L
    G = 4 * H
    cdt = compute_dtype

    h_off = _rup(E, 32)
    c_off = h_off + H
    SW = max(128, _rup(c_off + H, 128))                           # state lane width
    WL = max(128, _rup(max(G, _rup(H, 32) + _rup(O, 32)), 128))   # slab lane width
    OP = _rup(O, 32)
    out_w = max(128, _rup(OP + 2 * H + N, 128))

    # ---- plain-JAX glue: embedding gather + operand packing -----------------
    emb = params["embedding"].astype(jnp.float32)[decoder_input[:, 0]]   # (B, E)
    state = jnp.zeros((B, SW), jnp.float32)
    state = state.at[:, 0:E].set(emb)
    state = state.at[:, h_off:h_off + H].set(hidden_state[0].astype(jnp.float32))
    state = state.at[:, c_off:c_off + H].set(cell[0].astype(jnp.float32))

    enc_flat = encoder_outputs.reshape(B, N, H).astype(cdt)              # (B, N, H)

    # weight slab (compute dtype): rows [W_state (SW) ; W_ctx (H) ; W_fc (H)]
    w_state = jnp.zeros((SW, WL), jnp.float32)
    w_state = w_state.at[0:E, 0:G].set(params["w_ih"][:, 0:E].T)         # emb rows
    w_state = w_state.at[h_off:h_off + H, 0:G].set(params["w_hh"].T)     # h0 rows
    w_ctx = jnp.zeros((H, WL), jnp.float32).at[:, 0:G].set(params["w_ih"][:, E:E + H].T)
    w_fc = jnp.zeros((H, WL), jnp.float32).at[:, 0:O].set(params["fc_w"].T)
    w_slab = jnp.concatenate([w_state, w_ctx, w_fc], axis=0).astype(cdt)

    # scalar slab (f32): row0 = fused LSTM bias, row1 = [attn enc-weight | fc bias]
    scal = jnp.zeros((2, WL), jnp.float32)
    scal = scal.at[0, 0:G].set(params["b_ih"] + params["b_hh"])
    scal = scal.at[1, 0:H].set(params["attn_w"][0, H:])   # only the encoder half matters
    scal = scal.at[1, _rup(H, 32):_rup(H, 32) + O].set(params["fc_b"])

    kernel = functools.partial(_row_decoder_kernel, O=O, c_off=c_off,
                               approx_recip=(cdt != jnp.float32))
    vmem = pl.BlockSpec(memory_space=pltpu.MemorySpace.VMEM)
    packed = pl.pallas_call(
        kernel,
        out_shape=jax.ShapeDtypeStruct((B, out_w), jnp.float32),
        in_specs=[vmem, vmem, vmem, vmem],
        out_specs=vmem,
    )(enc_flat, state, w_slab, scal)

    logits = packed[:, 0:O]
    h1 = packed[:, OP:OP + H]
    c1 = packed[:, OP + H:OP + 2 * H]
    attn_w = packed[:, OP + 2 * H:OP + 2 * H + N]
    return logits, h1[None], c1[None], attn_w


def reference_forward(decoder_input, hidden_state, cell, encoder_outputs, params):
    """Pure-JAX f32 reference mirroring the PyTorch forward, for validation."""
    B, K, L, H = encoder_outputs.shape
    emb = params["embedding"][decoder_input[:, 0]]
    enc_flat = encoder_outputs.reshape(B, K * L, H)
    h0 = hidden_state[0]
    c0 = cell[0]

    hid_rep = jnp.repeat(h0[:, None, :], K * L, axis=1)
    cat = jnp.concatenate([hid_rep, enc_flat], axis=2)
    scores = jnp.einsum("bnk,ok->bno", cat, params["attn_w"])[:, :, 0] + params["attn_b"][0]
    attn_weights = jax.nn.softmax(scores, axis=1)
    context = jnp.einsum("bn,bnh->bh", attn_weights, enc_flat)

    x = jnp.concatenate([emb, context], axis=-1)
    gates = x @ params["w_ih"].T + h0 @ params["w_hh"].T + params["b_ih"] + params["b_hh"]
    i, f, g, o = jnp.split(gates, 4, axis=-1)
    i, f, o = jax.nn.sigmoid(i), jax.nn.sigmoid(f), jax.nn.sigmoid(o)
    g = jnp.tanh(g)
    c1 = f * c0 + i * g
    h1 = o * jnp.tanh(c1)
    logits = h1 @ params["fc_w"].T + params["fc_b"]
    return logits, h1[None], c1[None], attn_weights


if __name__ == "__main__":
    # RowDecoder(hidden_size=32, output_size=24, embedding_dim=16); B=8 fills sublanes.
    B, K, L = 8, 4, 4
    H, O, E = 32, 24, 16

    key = jax.random.PRNGKey(0)
    ks = jax.random.split(key, 12)
    params = {
        "embedding": jax.random.normal(ks[0], (O, E), jnp.float32) * 0.1,
        "attn_w":    jax.random.normal(ks[1], (1, 2 * H), jnp.float32) * 0.1,
        "attn_b":    jax.random.normal(ks[2], (1,), jnp.float32) * 0.1,
        "w_ih":      jax.random.normal(ks[3], (4 * H, E + H), jnp.float32) * 0.1,
        "w_hh":      jax.random.normal(ks[4], (4 * H, H), jnp.float32) * 0.1,
        "b_ih":      jax.random.normal(ks[5], (4 * H,), jnp.float32) * 0.1,
        "b_hh":      jax.random.normal(ks[6], (4 * H,), jnp.float32) * 0.1,
        "fc_w":      jax.random.normal(ks[7], (O, H), jnp.float32) * 0.1,
        "fc_b":      jax.random.normal(ks[8], (O,), jnp.float32) * 0.1,
    }

    decoder_input = jax.random.randint(ks[9], (B, 1), 0, O, dtype=jnp.int32)
    hidden_state = jax.random.normal(ks[10], (1, B, H), jnp.float32)
    cell = jax.random.normal(ks[11], (1, B, H), jnp.float32)
    encoder_outputs = jax.random.normal(jax.random.fold_in(key, 99), (B, K, L, H), jnp.float32)

    refs = reference_forward(decoder_input, hidden_state, cell, encoder_outputs, params)

    # --- strict f32 path: tight check against the pure-JAX reference --------
    outs_f32 = jax.block_until_ready(
        row_decoder_forward(decoder_input, hidden_state, cell, encoder_outputs,
                            params, compute_dtype=jnp.float32))
    for got, ref in zip(outs_f32, refs):
        assert got.shape == ref.shape, (got.shape, ref.shape)
        assert jnp.allclose(got, ref, atol=1e-4, rtol=1e-4), \
            float(jnp.max(jnp.abs(got - ref)))

    # --- default bf16-MXU-operand path (f32 accumulation): loose check ------
    outs_bf16 = jax.block_until_ready(
        row_decoder_forward(decoder_input, hidden_state, cell, encoder_outputs, params))
    for got, ref in zip(outs_bf16, refs):
        assert got.shape == ref.shape, (got.shape, ref.shape)
        assert jnp.allclose(got, ref, atol=1e-1, rtol=1e-1), \
            float(jnp.max(jnp.abs(got - ref)))

    print("KERNEL_OK")
</pallas_src>

<mosaic_0001>
module attributes {stable_mosaic.version = 11 : i64} {
  func.func @_row_decoder_kernel(%arg0: memref<8x16x32xf32, #tpu.memory_space<vmem>>, %arg1: memref<8x128xf32, #tpu.memory_space<vmem>>, %arg2: memref<192x128xf32, #tpu.memory_space<vmem>>, %arg3: memref<2x128xf32, #tpu.memory_space<vmem>>, %arg4: memref<8x128xf32, #tpu.memory_space<vmem>>) attributes {dimension_semantics = [], scalar_prefetch = 0 : i64, scratch_operands = 0 : i64, tpu.core_type = #tpu.core_type<tc>} {
    %c0 = arith.constant 0 : index
    %c0_0 = arith.constant 0 : index
    %c0_1 = arith.constant 0 : index
    %0 = vector.load %arg0[%c0, %c0_0, %c0_1] : memref<8x16x32xf32, #tpu.memory_space<vmem>>, vector<8x16x32xf32>
    %c0_2 = arith.constant 0 : index
    %c0_3 = arith.constant 0 : index
    %1 = vector.load %arg1[%c0_2, %c0_3] : memref<8x128xf32, #tpu.memory_space<vmem>>, vector<8x128xf32>
    %c0_4 = arith.constant 0 : index
    %c0_5 = arith.constant 0 : index
    %2 = vector.load %arg3[%c0_4, %c0_5] : memref<2x128xf32, #tpu.memory_space<vmem>>, vector<2x128xf32>
    %3 = vector.extract_strided_slice %2 {offsets = [1, 0], sizes = [1, 32], strides = [1, 1]} : vector<2x128xf32> to vector<1x32xf32>
    %4 = vector.shape_cast %3 : vector<1x32xf32> to vector<32xf32>
    %5 = vector.extract_strided_slice %2 {offsets = [0, 0], sizes = [1, 128], strides = [1, 1]} : vector<2x128xf32> to vector<1x128xf32>
    %6 = vector.shape_cast %5 : vector<1x128xf32> to vector<128xf32>
    %7 = vector.extract_strided_slice %2 {offsets = [1, 32], sizes = [1, 32], strides = [1, 1]} : vector<2x128xf32> to vector<1x32xf32>
    %8 = vector.shape_cast %7 : vector<1x32xf32> to vector<32xf32>
    %9 = vector.shape_cast %4 : vector<32xf32> to vector<1x1x32xf32>
    %10 = vector.broadcast %9 : vector<1x1x32xf32> to vector<8x16x32xf32>
    %11 = arith.mulf %0, %10 : vector<8x16x32xf32>
    %cst = arith.constant dense<0.000000e+00> : vector<8x16xf32>
    %12 = vector.multi_reduction <add>, %11, %cst [2] : vector<8x16x32xf32> to vector<8x16xf32>
    %cst_6 = arith.constant dense<0xFF800000> : vector<8xf32>
    %13 = vector.multi_reduction <maximumf>, %12, %cst_6 [1] : vector<8x16xf32> to vector<8xf32>
    %14 = vector.shape_cast %13 : vector<8xf32> to vector<8x1xf32>
    %15 = vector.broadcast %14 : vector<8x1xf32> to vector<8x16xf32>
    %16 = arith.subf %12, %15 : vector<8x16xf32>
    %17 = math.exp %16 : vector<8x16xf32>
    %cst_7 = arith.constant dense<0.000000e+00> : vector<8xf32>
    %18 = vector.multi_reduction <add>, %17, %cst_7 [1] : vector<8x16xf32> to vector<8xf32>
    %19 = vector.shape_cast %18 : vector<8xf32> to vector<8x1xf32>
    %20 = vector.broadcast %19 : vector<8x1xf32> to vector<8x16xf32>
    %21 = arith.divf %17, %20 : vector<8x16xf32>
    %22 = vector.shape_cast %21 : vector<8x16xf32> to vector<8x16x1xf32>
    %23 = vector.broadcast %22 : vector<8x16x1xf32> to vector<8x16x32xf32>
    %24 = arith.mulf %23, %0 : vector<8x16x32xf32>
    %cst_8 = arith.constant dense<0.000000e+00> : vector<8x32xf32>
    %25 = vector.multi_reduction <add>, %24, %cst_8 [1] : vector<8x16x32xf32> to vector<8x32xf32>
    %c0_9 = arith.constant 0 : index
    %c0_10 = arith.constant 0 : index
    %26 = vector.load %arg2[%c0_9, %c0_10] : memref<192x128xf32, #tpu.memory_space<vmem>>, vector<128x128xf32>
    %cst_11 = arith.constant dense<0.000000e+00> : vector<8x128xf32>
    %27 = tpu.matmul %1, %26, %cst_11 {dimension_numbers = #tpu.dot_dimension_numbers<[1], [0], [0], [1], [0, 0, 1, 1], [], []>} : vector<8x128xf32>, vector<128x128xf32>, vector<8x128xf32> -> vector<8x128xf32>
    %c128 = arith.constant 128 : index
    %c0_12 = arith.constant 0 : index
    %28 = vector.load %arg2[%c128, %c0_12] : memref<192x128xf32, #tpu.memory_space<vmem>>, vector<32x128xf32>
    %cst_13 = arith.constant dense<0.000000e+00> : vector<8x128xf32>
    %29 = tpu.matmul %25, %28, %cst_13 {dimension_numbers = #tpu.dot_dimension_numbers<[1], [0], [0], [1], [0, 0, 1, 1], [], []>} : vector<8x32xf32>, vector<32x128xf32>, vector<8x128xf32> -> vector<8x128xf32>
    %30 = arith.addf %27, %29 : vector<8x128xf32>
    %31 = vector.shape_cast %6 : vector<128xf32> to vector<1x128xf32>
    %32 = vector.broadcast %31 : vector<1x128xf32> to vector<8x128xf32>
    %33 = arith.addf %30, %32 : vector<8x128xf32>
    %34 = arith.negf %33 : vector<8x128xf32>
    %35 = math.exp %34 : vector<8x128xf32>
    %cst_14 = arith.constant 1.000000e+00 : f32
    %36 = vector.broadcast %cst_14 : f32 to vector<8x128xf32>
    %37 = arith.addf %36, %35 : vector<8x128xf32>
    %38 = arith.divf %36, %37 : vector<8x128xf32>
    %39 = math.tanh %33 : vector<8x128xf32>
    %40 = vector.extract_strided_slice %38 {offsets = [0, 0], sizes = [8, 32], strides = [1, 1]} : vector<8x128xf32> to vector<8x32xf32>
    %41 = vector.extract_strided_slice %38 {offsets = [0, 32], sizes = [8, 32], strides = [1, 1]} : vector<8x128xf32> to vector<8x32xf32>
    %42 = vector.extract_strided_slice %39 {offsets = [0, 64], sizes = [8, 32], strides = [1, 1]} : vector<8x128xf32> to vector<8x32xf32>
    %43 = vector.extract_strided_slice %38 {offsets = [0, 96], sizes = [8, 32], strides = [1, 1]} : vector<8x128xf32> to vector<8x32xf32>
    %44 = vector.extract_strided_slice %1 {offsets = [0, 64], sizes = [8, 32], strides = [1, 1]} : vector<8x128xf32> to vector<8x32xf32>
    %45 = arith.mulf %41, %44 : vector<8x32xf32>
    %46 = arith.mulf %40, %42 : vector<8x32xf32>
    %47 = arith.addf %45, %46 : vector<8x32xf32>
    %48 = math.tanh %47 : vector<8x32xf32>
    %49 = arith.mulf %43, %48 : vector<8x32xf32>
    %c160 = arith.constant 160 : index
    %c0_15 = arith.constant 0 : index
    %50 = vector.load %arg2[%c160, %c0_15] : memref<192x128xf32, #tpu.memory_space<vmem>>, vector<32x128xf32>
    %cst_16 = arith.constant dense<0.000000e+00> : vector<8x128xf32>
    %51 = tpu.matmul %49, %50, %cst_16 {dimension_numbers = #tpu.dot_dimension_numbers<[1], [0], [0], [1], [0, 0, 1, 1], [], []>} : vector<8x32xf32>, vector<32x128xf32>, vector<8x128xf32> -> vector<8x128xf32>
    %52 = vector.extract_strided_slice %51 {offsets = [0, 0], sizes = [8, 32], strides = [1, 1]} : vector<8x128xf32> to vector<8x32xf32>
    %53 = vector.shape_cast %8 : vector<32xf32> to vector<1x32xf32>
    %54 = vector.broadcast %53 : vector<1x32xf32> to vector<8x32xf32>
    %55 = arith.addf %52, %54 : vector<8x32xf32>
    %cst_17 = arith.constant 0.000000e+00 : f32
    %56 = vector.broadcast %cst_17 : f32 to vector<8x16xf32>
    %57 = tpu.concatenate %55, %49, %47, %21, %56 in 1 : vector<8x32xf32>, vector<8x32xf32>, vector<8x32xf32>, vector<8x16xf32>, vector<8x16xf32> -> vector<8x128xf32>
    %c0_18 = arith.constant 0 : index
    %c0_19 = arith.constant 0 : index
    %58 = vector.load %arg4[%c0_18, %c0_19] : memref<8x128xf32, #tpu.memory_space<vmem>>, vector<8x128xf32>
    tpu.vector_store %arg4[%c0_18, %c0_19], %57 {strides = array<i32>} : memref<8x128xf32, #tpu.memory_space<vmem>>, vector<8x128xf32>,
    return
  }
}

</mosaic_0001>

<bundles_post_ra>
// kernel: tpu_custom_call.1
= control target key start
LH: loop header
LB: loop body
LE: loop exit
PB: predicated region body
PF: predicated region fallthrough
CT: control target
= control target key end

     0   :  { %9 = vsyncpa [#allocation3], 0  ;;  %s1970_s0 = inlined_call_operand.hbm [shape: f32[8,16,32], index: 0, kind: input, shape index: {}]   ;;  %s1971_s1 = inlined_call_operand.hbm [shape: f32[8,128], index: 1, kind: input, shape index: {}]   ;;  %s1972_s2 = inlined_call_operand.hbm [shape: f32[192,128], index: 2, kind: input, shape index: {}]   ;;  %s1973_s3 = inlined_call_operand.vmem [shape: f32[2,128], index: 3, kind: input, shape index: {}]   ;;  %s1974_s4 = inlined_call_operand.hbm [shape: f32[8,128], index: 4, kind: output, shape index: {}]  }
   0x1   :  { %10 = vsyncpa [#allocation6], 0 }
   0x2   :  { %11 = vsyncpa [#allocation4], 0  ;;  %s1421_s15 = smov [#allocation5]   ;;  %s1422_s17 = smov [#allocation2]  }
   0x3   :  { %s30_s16 = sshll.u32 %s1421_s15, 4  ;;  %s17_s18 = sshll.u32 %s1422_s17, 4  ;;  %s31_s16 = int_to_ptr.vmem [resolvable:$true] %s30_s16  ;;  %s1459_s18 = int_to_ptr.vmem [resolvable:$true] %s17_s18 }
   0x4   :  { %s1327_s21 = scalar_lea.hbm %s1971_s1, 128 }
   0x5   :  { %p1328_p0 = scmp.ne.s32.totalorder %s1971_s1, %s1327_s21  ;;  %p1331_p1 = scmp.lt.u32.totalorder %s1327_s21, %s1971_s1 }
   0x7   :  { %p1333_p2 = pnand %p1331_p1, %p1328_p0 }
   0x9   :  { %1336 = shalt.err (!%p1333_p2)
}
   0xa   :  { %s1337_s26 = scalar_lea.vmem %s31_s16, 128  ;;  %p1342_p4 = scmp.lt.s32.totalorder %s31_s16, %s31_s16 }
   0xb   :  { %p1338_p3 = scmp.ne.s32.totalorder %s31_s16, %s1337_s26  ;;  %p1343_p5 = scmp.lt.s32.totalorder %s1337_s26, %s1337_s26 }
   0xd   :  { %p1344_p6 = por %p1343_p5, %p1342_p4 }
   0xf   :  { %p1345_p7 = pnand %p1344_p6, %p1338_p3 }
  0x11   :  { %1348 = shalt.err (!%p1345_p7)
}
  0x12   :  { %33 = dma.hbm_to_vmem [thread:$0]  %s1971_s1, 128, %s31_s16, [#allocation6]  }
  0x13   :  { %s1349_s5 = scalar_lea.hbm %s1970_s0, 2048 }
  0x14   :  { %p1350_p8 = scmp.ne.s32.totalorder %s1970_s0, %s1349_s5  ;;  %p1353_p9 = scmp.lt.u32.totalorder %s1349_s5, %s1970_s0 }
  0x16   :  { %p1355_p10 = pnand %p1353_p9, %p1350_p8 }
  0x18   :  { %1358 = shalt.err (!%p1355_p10)
}
  0x19   :  { %s1359_s10 = scalar_lea.vmem %s1459_s18, 2048  ;;  %p1364_p12 = scmp.lt.s32.totalorder %s1459_s18, %s1459_s18 }
  0x1a   :  { %p1360_p11 = scmp.ne.s32.totalorder %s1459_s18, %s1359_s10  ;;  %p1365_p13 = scmp.lt.s32.totalorder %s1359_s10, %s1359_s10 }
  0x1c   :  { %p1366_p0 = por %p1365_p13, %p1364_p12 }
  0x1e   :  { %p1367_p1 = pnand %p1366_p0, %p1360_p11 }
  0x20   :  { %1370 = shalt.err (!%p1367_p1)
}
  0x21   :  { %s1423_s1 = smov 128   ;;  %s1424_s11 = smov 8  }
  0x22   :  { %23 = dma.hbm_to_vmem [thread:$0]  %s1970_s0, 2048, %s1459_s18, [#allocation3], %s1423_s1, %s1423_s1, %s1424_s11  }
  0x23   :  { %s1425_s14 = smov [#allocation7]   ;;  %s1371_s19 = scalar_lea.hbm %s1972_s2, 3072 }
  0x24   :  { %s39_s15 = sshll.u32 %s1425_s14, 4  ;;  %p1372_p2 = scmp.ne.s32.totalorder %s1972_s2, %s1371_s19  ;;  %s40_s15 = int_to_ptr.vmem [resolvable:$true] %s39_s15 }
  0x25   :  { %p1375_p3 = scmp.lt.u32.totalorder %s1371_s19, %s1972_s2 }
  0x27   :  { %p1377_p4 = pnand %p1375_p3, %p1372_p2 }
  0x29   :  { %1380 = shalt.err (!%p1377_p4)
}
  0x2a   :  { %s1381_s24 = scalar_lea.vmem %s40_s15, 3072  ;;  %p1386_p6 = scmp.lt.s32.totalorder %s40_s15, %s40_s15 }
  0x2b   :  { %p1382_p5 = scmp.ne.s32.totalorder %s40_s15, %s1381_s24  ;;  %p1387_p7 = scmp.lt.s32.totalorder %s1381_s24, %s1381_s24 }
  0x2d   :  { %p1388_p8 = por %p1387_p7, %p1386_p6 }
  0x2f   :  { %p1389_p9 = pnand %p1388_p8, %p1382_p5 }
  0x31   :  { %1392 = shalt.err (!%p1389_p9)
}
  0x32   :  { %45 = dma.hbm_to_vmem [thread:$0]  %s1972_s2, 3072, %s40_s15, [#allocation6], %s1423_s1, %s1423_s1, %s1424_s11  }
  0x33   :  { %1415 = dma.done.wait [#allocation3], 2048  }
  0x34   :  { %1416 = vsyncadd [#allocation3], 4294965248 }
  0x35   :  { %1417 = dma.done.wait [#allocation6], 3200  }
  0x36   :  { %1418 = vsyncadd [#allocation6], 4294964096  ;;  %v75_v0 = vlaneseq  ;;  %v1508_v3 = vld [vmem:[#allocation2 + $0x10] sm:$0xff]  ;;  %v74_v4 = vld [vmem:[%s1973_s3] sm:$0x3]  ;;  %vm95_vm0 = vcmask 261120  }
  0x37   :  { %v1513_v5 = vld [vmem:[#allocation2] sm:$0xff]  ;;  %v1518_v7 = vld [vmem:[#allocation2 + $0x18] sm:$0xff]  ;;  %v1520_v8 = vld [vmem:[#allocation2 + $0x8] sm:$0xff]  ;;  %vm171_vm1 = vcmask 130112   ;;  %vm236_vm2 = vcmask 1041409   ;;  %vm238_vm3 = vcmask 1042434  }
  0x38   :  { %v1503_v1 = vshrl.u32 %v75_v0, 7  ;;  %v1530_v13 = vld [vmem:[#allocation2 + $0x28] sm:$0xff]  ;;  %v1532_v14 = vld [vmem:[#allocation2 + $0x20] sm:$0xff]  ;;  %v1542_v21 = vld [vmem:[#allocation2 + $0x38] sm:$0xff]  ;;  %v1607_v59 = vand.u32 127, %v75_v0  ;;  %vm240_vm4 = vcmask 1043459  }
  0x39   :  { %v1544_v22 = vld [vmem:[#allocation2 + $0x30] sm:$0xff]  ;;  %v1552_v27 = vld [vmem:[#allocation2 + $0x48] sm:$0xff]  ;;  %v1554_v28 = vld [vmem:[#allocation2 + $0x40] sm:$0xff]  ;;  %vm242_vm5 = vcmask 1044484   ;;  %vm244_vm6 = vcmask 1045509   ;;  %vm246_vm7 = vcmask 1046534  }
  0x3a   :  { %v1506_v2 = vsub.s32 1, %v1503_v1  ;;  %v1562_v33 = vld [vmem:[#allocation2 + $0x58] sm:$0xff]  ;;  %v1564_v34 = vld [vmem:[#allocation2 + $0x50] sm:$0xff]  ;;  %v1572_v39 = vld [vmem:[#allocation2 + $0x68] sm:$0xff]  ;;  %v166_v60 = vadd.s32 4294967288, %v1607_v59  ;;  %vm248_vm8 = vcmask 1047559  }
  0x3b   :  { %v1574_v40 = vld [vmem:[#allocation2 + $0x60] sm:$0xff]  ;;  %v1582_v45 = vld [vmem:[#allocation2 + $0x78] sm:$0xff]  ;;  %v1584_v46 = vld [vmem:[#allocation2 + $0x70] sm:$0xff]  ;;  %vm251_vm9 = vcmask 130048   ;;  %vm1428_vm10 = vmmov 0   ;;  %s1430_s2 = smov 96  }
  0x3c   :  { %v1516_v6 = vrot.slane %v74_v4, %v1506_v2  ;;  %v1615_v63 = vsub.s32 %v166_v60, %v1503_v1  ;;  %vm1035_vm11 = vcmask 917312   ;;  %s1431_s29 = smov 64   ;;  %vm1109_vm12 = vcmask 523264   ;;  %s1433_s30 = smov [#allocation8]  }
  0x3d   :  { %vm1111_vm13 = vcmask 785408   ;;  %s1122_s5 = sshll.u32 %s1433_s30, 4  ;;  %vm1113_vm14 = vcmask 916480   ;;  %s1123_s5 = int_to_ptr.vmem [resolvable:$true] %s1122_s5 }
  0x3e   :  { %v81_v9 = vmul.f32 %v1516_v6, %v1508_v3  ;;  %v79_v10 = vmul.f32 %v1516_v6, %v1513_v5  ;;  %v82_v11 = vmul.f32 %v1516_v6, %v1518_v7  ;;  %v80_v12 = vmul.f32 %v1516_v6, %v1520_v8  ;;  %s1393_s6 = scalar_lea.vmem %s1123_s5, 128  ;;  %p1398_p11 = scmp.lt.s32.totalorder %s1123_s5, %s1123_s5 }
  0x3f   :  { %v84_v19 = vmul.f32 %v1516_v6, %v1530_v13  ;;  %v83_v20 = vmul.f32 %v1516_v6, %v1532_v14  ;;  %v86_v25 = vmul.f32 %v1516_v6, %v1542_v21  ;;  %v85_v26 = vmul.f32 %v1516_v6, %v1544_v22  ;;  %p1394_p10 = scmp.ne.s32.totalorder %s1123_s5, %s1393_s6  ;;  %p1399_p12 = scmp.lt.s32.totalorder %s1393_s6, %s1393_s6 }
  0x40   :  { %v102_v15 = vsel %vm95_vm0, %v81_v9, 0.0  ;;  %v96_v16 = vsel %vm95_vm0, %v79_v10, 0.0  ;;  %v105_v17 = vsel %vm95_vm0, %v82_v11, 0.0  ;;  %v99_v18 = vsel %vm95_vm0, %v80_v12, 0.0 }
  0x41   :  { %103 = vadd.xlane.f32.xlu1 %v102_v15  ;;  %97 = vadd.xlane.f32.xlu0 %v96_v16  ;;  %v111_v23 = vsel %vm95_vm0, %v84_v19, 0.0  ;;  %v108_v24 = vsel %vm95_vm0, %v83_v20, 0.0  ;;  %v117_v29 = vsel %vm95_vm0, %v86_v25, 0.0  ;;  %v114_v30 = vsel %vm95_vm0, %v85_v26, 0.0  ;;  %p1400_p13 = por %p1399_p12, %p1398_p11 }
  0x42   :  { %v88_v31 = vmul.f32 %v1516_v6, %v1552_v27  ;;  %v87_v32 = vmul.f32 %v1516_v6, %v1554_v28  ;;  %v90_v37 = vmul.f32 %v1516_v6, %v1562_v33  ;;  %v89_v38 = vmul.f32 %v1516_v6, %v1564_v34 }
  0x43   :  { %v92_v43 = vmul.f32 %v1516_v6, %v1572_v39  ;;  %v91_v44 = vmul.f32 %v1516_v6, %v1574_v40  ;;  %v94_v49 = vmul.f32 %v1516_v6, %v1582_v45  ;;  %v93_v50 = vmul.f32 %v1516_v6, %v1584_v46  ;;  %p1401_p0 = pnand %p1400_p13, %p1394_p10 }
  0x44   :  { %v123_v35 = vsel %vm95_vm0, %v88_v31, 0.0  ;;  %v120_v36 = vsel %vm95_vm0, %v87_v32, 0.0  ;;  %v129_v41 = vsel %vm95_vm0, %v90_v37, 0.0  ;;  %v126_v42 = vsel %vm95_vm0, %v89_v38, 0.0 }
  0x45   :  { %106 = vadd.xlane.f32.xlu1 %v105_v17  ;;  %100 = vadd.xlane.f32.xlu0 %v99_v18  ;;  %v135_v47 = vsel %vm95_vm0, %v92_v43, 0.0  ;;  %v132_v48 = vsel %vm95_vm0, %v91_v44, 0.0  ;;  %v141_v51 = vsel %vm95_vm0, %v94_v49, 0.0  ;;  %v138_v52 = vsel %vm95_vm0, %v93_v50, 0.0 }
  0x46   :  { %v1623_v10 = vsub.s32 %v1607_v59, %v1503_v1 }
  0x49   :  { %112 = vadd.xlane.f32.xlu1 %v111_v23  ;;  %109 = vadd.xlane.f32.xlu0 %v108_v24 }
  0x4d   :  { %118 = vadd.xlane.f32.xlu1 %v117_v29  ;;  %115 = vadd.xlane.f32.xlu0 %v114_v30 }
  0x51   :  { %124 = vadd.xlane.f32.xlu1 %v123_v35  ;;  %121 = vadd.xlane.f32.xlu0 %v120_v36 }
  0x55   :  { %130 = vadd.xlane.f32.xlu1 %v129_v41  ;;  %127 = vadd.xlane.f32.xlu0 %v126_v42 }
  0x59   :  { %136 = vadd.xlane.f32.xlu1 %v135_v47  ;;  %133 = vadd.xlane.f32.xlu0 %v132_v48 }
  0x5d   :  { %142 = vadd.xlane.f32.xlu1 %v141_v51  ;;  %139 = vadd.xlane.f32.xlu0 %v138_v52 }
  0xce   :  { %v1594_v53 = vpop.xlane.xlu1 %103  ;;  %v1596_v54 = vpop.xlane.xlu0 %97 }
  0xcf   :  { %v176_v18 = vrot.slane %v1594_v53, %v1623_v10  ;;  %v165_v19 = vrot.slane %v1596_v54, %v1623_v10 }
  0xd2   :  { %v1598_v55 = vpop.xlane.xlu1 %106  ;;  %v1600_v56 = vpop.xlane.xlu0 %100 }
  0xd3   :  { %v180_v0 = vrot.slane %v1598_v55, %v1615_v63  ;;  %v170_v11 = vrot.slane %v1600_v56, %v1615_v63 }
  0xd5   :  { %v181_v26 = vsel %vm171_vm1, %v180_v0, %v176_v18  ;;  %v172_v29 = vsel %vm171_vm1, %v170_v11, %v165_v19 }
  0xd6   :  { %v1602_v57 = vpop.xlane.xlu1 %112  ;;  %v1604_v58 = vpop.xlane.xlu0 %109  ;;  %v237_v42 = vsel %vm236_vm2, %v181_v26, %v172_v29  ;;  %v1976_v29 = vsub.s32 5, %v1503_v1 }
  0xd7   :  { %v189_v12 = vrot.slane %v1602_v57, %v1615_v63  ;;  %v185_v15 = vrot.slane %v1604_v58, %v1623_v10 }
  0xd9   :  { %v190_v32 = vsel %vm171_vm1, %v189_v12, %v185_v15 }
  0xda   :  { %v1610_v61 = vpop.xlane.xlu1 %118  ;;  %v1612_v62 = vpop.xlane.xlu0 %115  ;;  %v239_v44 = vsel %vm238_vm3, %v190_v32, %v237_v42  ;;  %v1978_v32 = vsub.s32 2, %v1503_v1 }
  0xdb   :  { %v198_v20 = vrot.slane %v1610_v61, %v1615_v63  ;;  %v194_v23 = vrot.slane %v1612_v62, %v1623_v10 }
  0xdd   :  { %v199_v37 = vsel %vm171_vm1, %v198_v20, %v194_v23  ;;  %v1426_v20 = vmov 0   ;;  %v1683_v23 = vsub.s32 0, %v1503_v1 }
  0xde   :  { %v1617_v4 = vpop.xlane.xlu1 %124  ;;  %v1619_v9 = vpop.xlane.xlu0 %121  ;;  %v241_v48 = vsel %vm240_vm4, %v199_v37, %v239_v44  ;;  %1269 = vset.pattern.permute.xlu0 %v1426_v20  ;;  %1268 = vset.pattern.permute.xlu1 %v1426_v20 }
  0xdf   :  { %v207_v24 = vrot.slane %v1617_v4, %v1615_v63  ;;  %v203_v25 = vrot.slane %v1619_v9, %v1623_v10 }
  0xe1   :  { %v208_v43 = vsel %vm171_vm1, %v207_v24, %v203_v25 }
  0xe2   :  { %v1633_v16 = vpop.xlane.xlu1 %130  ;;  %v1635_v17 = vpop.xlane.xlu0 %127  ;;  %v243_v0 = vsel %vm242_vm5, %v208_v43, %v241_v48 }
  0xe3   :  { %v216_v30 = vrot.slane %v1633_v16, %v1615_v63  ;;  %v212_v31 = vrot.slane %v1635_v17, %v1623_v10 }
  0xe5   :  { %v217_v47 = vsel %vm171_vm1, %v216_v30, %v212_v31 }
  0xe6   :  { %v1656_v35 = vpop.xlane.xlu1 %136  ;;  %v1658_v36 = vpop.xlane.xlu0 %133  ;;  %v245_v11 = vsel %vm244_vm6, %v217_v47, %v243_v0 }
  0xe7   :  { %v225_v38 = vrot.slane %v1656_v35, %v1615_v63  ;;  %v221_v41 = vrot.slane %v1658_v36, %v1623_v10 }
  0xe9   :  { %v226_v51 = vsel %vm171_vm1, %v225_v38, %v221_v41  ;;  %v1975_v38 = vsub.s32 6, %v1503_v1 }
  0xea   :  { %v1670_v49 = vpop.xlane.xlu1 %142  ;;  %v140_v50 = vpop.xlane.xlu0 %139  ;;  %v247_v15 = vsel %vm246_vm7, %v226_v51, %v245_v11  ;;  %v1977_v51 = vsub.s32 3, %v1503_v1 }
  0xeb   :  { %v234_v52 = vrot.slane %v1670_v49, %v1615_v63  ;;  %v230_v60 = vrot.slane %v140_v50, %v1623_v10 }
  0xed   :  { %v235_v12 = vsel %vm171_vm1, %v234_v52, %v230_v60 }
  0xee   :  { %v249_v18 = vsel %vm248_vm8, %v235_v12, %v247_v15 }
  0xef   :  { %v252_v19 = vsel %vm251_vm9, %v249_v18, -inf }
  0xf0   :  { %253 = vmax.xlane.f32.xlu0 %v252_v19 }
 0x17d   :  { %v254_v24 = vpop.xlane.xlu0 %253 }
 0x17e   :  { %v259_v25 = vrot.slane %v254_v24, %v1683_v23  ;;  %v263_v26 = vrot.slane %v254_v24, %v1506_v2  ;;  %v1695_v41 = vrot.slane %v254_v24, %v1976_v29  ;;  %v267_v44 = vrot.slane %v254_v24, %v1978_v32 }
 0x17f   :  { %v271_v12 = vrot.slane %v254_v24, %v1977_v51 }
 0x180   :  { %v296_v30 = vsub.f32 %v1596_v54, %v259_v25  ;;  %v297_v31 = vsub.f32 %v1600_v56, %v259_v25  ;;  %v298_v37 = vsub.f32 %v1594_v53, %v263_v26  ;;  %v299_v47 = vsub.f32 %v1598_v55, %v263_v26 }
 0x181   :  { %v1979_v56 = vsub.s32 7, %v1503_v1  ;;  %v1703_v53 = vrot.slane %v254_v24, %v1975_v38  ;;  %v306_v48 = vsub.f32 %v1635_v17, %v1695_v41  ;;  %v300_v52 = vsub.f32 %v1604_v58, %v267_v44 }
 0x182   :  { %v312_v42 = vmul.f32 1.442695, %v296_v30  ;;  %v314_v43 = vmul.f32 1.442695, %v297_v31  ;;  %v316_v54 = vmul.f32 1.442695, %v298_v37  ;;  %v301_v15 = vsub.f32 %v1602_v57, %v267_v44 }
 0x183   :  { %v318_v60 = vmul.f32 1.442695, %v299_v47  ;;  %v287_v55 = vrot.slane %v254_v24, %v1979_v56  ;;  %v308_v0 = vsub.f32 %v1658_v36, %v1703_v53  ;;  %v332_v11 = vmul.f32 1.442695, %v306_v48 }
 0x184   :  { %1270 = vpow2.f32 %v312_v42  ;;  %v320_v17 = vmul.f32 1.442695, %v300_v52  ;;  %v274_v25 = vsub.s32 4, %v1503_v1  ;;  %v302_v36 = vsub.f32 %v1612_v62, %v271_v12 }
 0x185   :  { %1272 = vpow2.f32 %v314_v43  ;;  %v310_v19 = vsub.f32 %v140_v50, %v287_v55  ;;  %v336_v58 = vmul.f32 1.442695, %v308_v0  ;;  %v322_v26 = vmul.f32 1.442695, %v301_v15 }
 0x186   :  { %1274 = vpow2.f32 %v316_v54  ;;  %v275_v50 = vrot.slane %v254_v24, %v274_v25  ;;  %v303_v31 = vsub.f32 %v1610_v61, %v271_v12  ;;  %v324_v37 = vmul.f32 1.442695, %v302_v36 }
 0x187   :  { %1276 = vpow2.f32 %v318_v60  ;;  %v340_v30 = vmul.f32 1.442695, %v310_v19  ;;  %v307_v52 = vsub.f32 %v1633_v16, %v1695_v41  ;;  %v311_v15 = vsub.f32 %v1670_v49, %v287_v55 }
 0x188   :  { %1278 = vpow2.f32 %v332_v11  ;;  %v304_v43 = vsub.f32 %v1619_v9, %v275_v50  ;;  %v326_v44 = vmul.f32 1.442695, %v303_v31  ;;  %v305_v24 = vsub.f32 %v1617_v4, %v275_v50 }
 0x189   :  { %1280 = vpow2.f32 %v320_v17  ;;  %v309_v4 = vsub.f32 %v1656_v35, %v1703_v53  ;;  %v334_v11 = vmul.f32 1.442695, %v307_v52  ;;  %v342_v17 = vmul.f32 1.442695, %v311_v15 }
 0x18a   :  { %1282 = vpow2.f32 %v336_v58  ;;  %v328_v54 = vmul.f32 1.442695, %v304_v43  ;;  %v330_v60 = vmul.f32 1.442695, %v305_v24 }
 0x18b   :  { %1284 = vpow2.f32 %v322_v26  ;;  %v338_v16 = vmul.f32 1.442695, %v309_v4 }
 0x18c   :  { %1286 = vpow2.f32 %v340_v30 }
 0x18d   :  { %1288 = vpow2.f32 %v324_v37 }
 0x18e   :  { %v1716_v18 = vpop.eup %1270  ;;  %1290 = vpow2.f32 %v326_v44 }
 0x18f   :  { %v1718_v20 = vpop.eup %1272  ;;  %361 = vperm.xlu1 %1268, %v1716_v18   ;;  %1292 = vpow2.f32 %v328_v54 }
 0x190   :  { %364 = vperm.xlu0 %1269, %v1718_v20   ;;  %v1724_v57 = vpop.eup %1274  ;;  %1294 = vpow2.f32 %v330_v60 }
 0x191   :  { %v1730_v42 = vpop.eup %1276  ;;  %1296 = vpow2.f32 %v334_v11 }
 0x192   :  { %v1733_v62 = vpop.eup %1278  ;;  %1298 = vpow2.f32 %v338_v16 }
 0x193   :  { %367 = vperm.xlu1 %1268, %v1724_v57   ;;  %v1737_v47 = vpop.eup %1280  ;;  %1300 = vpow2.f32 %v342_v17 }
 0x194   :  { %391 = vperm.xlu0 %1269, %v1733_v62   ;;  %v1740_v61 = vpop.eup %1282 }
 0x195   :  { %v1744_v48 = vpop.eup %1284 }
 0x196   :  { %v1747_v9 = vpop.eup %1286 }
 0x197   :  { %370 = vperm.xlu1 %1268, %v1730_v42   ;;  %v1752_v0 = vpop.eup %1288 }
 0x198   :  { %397 = vperm.xlu0 %1269, %v1740_v61   ;;  %v1757_v12 = vpop.eup %1290 }
 0x199   :  { %v1761_v41 = vpop.eup %1292 }
 0x19a   :  { %v1764_v19 = vpop.eup %1294 }
 0x19b   :  { %373 = vperm.xlu1 %1268, %v1737_v47   ;;  %v1767_v35 = vpop.eup %1296 }
 0x19c   :  { %403 = vperm.xlu0 %1269, %v1747_v9   ;;  %v1770_v53 = vpop.eup %1298 }
 0x19d   :  { %v1773_v49 = vpop.eup %1300 }
 0x19f   :  { %376 = vperm.xlu1 %1268, %v1744_v48  }
 0x1a3   :  { %379 = vperm.xlu1 %1268, %v1752_v0  }
 0x1a7   :  { %382 = vperm.xlu1 %1268, %v1757_v12  }
 0x1ab   :  { %385 = vperm.xlu1 %1268, %v1761_v41  }
 0x1af   :  { %388 = vperm.xlu1 %1268, %v1764_v19  }
 0x1b3   :  { %394 = vperm.xlu1 %1268, %v1767_v35  }
 0x1b7   :  { %400 = vperm.xlu1 %1268, %v1770_v53  }
 0x1bb   :  { %406 = vperm.xlu1 %1268, %v1773_v49  }
 0x20e   :  { %v362_v55 = vpop.permute.xlu1 %361 }
 0x20f   :  { %v365_v31 = vpop.permute.xlu0 %364  ;;  %v411_v15 = vrot.slane %v362_v55, %v1623_v10 }
 0x210   :  { %v415_v11 = vrot.slane %v365_v31, %v1615_v63 }
 0x212   :  { %v368_v58 = vpop.permute.xlu1 %367  ;;  %v416_v55 = vsel %vm171_vm1, %v415_v11, %v411_v15 }
 0x213   :  { %v392_v44 = vpop.permute.xlu0 %391  ;;  %v420_v16 = vrot.slane %v368_v58, %v1623_v10 }
 0x214   :  { %v456_v58 = vrot.slane %v392_v44, %v1623_v10 }
 0x216   :  { %v371_v36 = vpop.permute.xlu1 %370 }
 0x217   :  { %v424_v54 = vrot.slane %v371_v36, %v1615_v63  ;;  %v398_v52 = vpop.permute.xlu0 %397 }
 0x219   :  { %v425_v51 = vsel %vm171_vm1, %v424_v54, %v420_v16 }
 0x21a   :  { %v374_v26 = vpop.permute.xlu1 %373  ;;  %v480_v54 = vsel %vm236_vm2, %v425_v51, %v416_v55 }
 0x21b   :  { %v429_v38 = vrot.slane %v374_v26, %v1623_v10 }
 0x21e   :  { %v377_v30 = vpop.permute.xlu1 %376 }
 0x21f   :  { %v433_v60 = vrot.slane %v377_v30, %v1615_v63 }
 0x221   :  { %v434_v30 = vsel %vm171_vm1, %v433_v60, %v429_v38 }
 0x222   :  { %v380_v50 = vpop.permute.xlu1 %379  ;;  %v481_v38 = vsel %vm238_vm3, %v434_v30, %v480_v54 }
 0x223   :  { %v438_v36 = vrot.slane %v380_v50, %v1623_v10  ;;  %v404_v50 = vpop.permute.xlu0 %403 }
 0x224   :  { %v474_v15 = vrot.slane %v404_v50, %v1623_v10 }
 0x226   :  { %v383_v37 = vpop.permute.xlu1 %382 }
 0x227   :  { %v442_v17 = vrot.slane %v383_v37, %v1615_v63 }
 0x229   :  { %v443_v37 = vsel %vm171_vm1, %v442_v17, %v438_v36 }
 0x22a   :  { %v386_v43 = vpop.permute.xlu1 %385  ;;  %v482_v60 = vsel %vm240_vm4, %v443_v37, %v481_v38 }
 0x22b   :  { %v447_v31 = vrot.slane %v386_v43, %v1623_v10 }
 0x22e   :  { %v389_v24 = vpop.permute.xlu1 %388 }
 0x22f   :  { %v451_v29 = vrot.slane %v389_v24, %v1615_v63  ;;  %v465_v24 = vrot.slane %v398_v52, %v1623_v10 }
 0x232   :  { %v395_v4 = vpop.permute.xlu1 %394 }
 0x233   :  { %v460_v32 = vrot.slane %v395_v4, %v1615_v63  ;;  %v452_v4 = vsel %vm171_vm1, %v451_v29, %v447_v31  ;;  %v1980_v31 = vsub.s32 7, %v1503_v1 }
 0x235   :  { %v461_v43 = vsel %vm171_vm1, %v460_v32, %v456_v58 }
 0x236   :  { %v401_v56 = vpop.permute.xlu1 %400 }
 0x237   :  { %v469_v26 = vrot.slane %v401_v56, %v1615_v63  ;;  %v483_v56 = vsel %vm242_vm5, %v452_v4, %v482_v60 }
 0x238   :  { %v484_v51 = vsel %vm244_vm6, %v461_v43, %v483_v56 }
 0x239   :  { %v470_v11 = vsel %vm171_vm1, %v469_v26, %v465_v24  ;;  %v1981_v24 = vsub.s32 2, %v1503_v1 }
 0x23a   :  { %v407_v44 = vpop.permute.xlu1 %406  ;;  %v485_v29 = vsel %vm246_vm7, %v470_v11, %v484_v51 }
 0x23b   :  { %v478_v52 = vrot.slane %v407_v44, %v1615_v63 }
 0x23d   :  { %v479_v16 = vsel %vm171_vm1, %v478_v52, %v474_v15 }
 0x23e   :  { %v486_v17 = vsel %vm248_vm8, %v479_v16, %v485_v29 }
 0x23f   :  { %v488_v32 = vsel %vm251_vm9, %v486_v17, 0.0 }
 0x240   :  { %489 = vadd.xlane.f32.xlu0 %v488_v32 }
 0x2cd   :  { %v490_v36 = vpop.xlane.xlu0 %489 }
 0x2ce   :  { %v511_v30 = vrot.slane %v490_v36, %v274_v25  ;;  %v495_v10 = vrot.slane %v490_v36, %v1683_v23  ;;  %v523_v63 = vrot.slane %v490_v36, %v1980_v31  ;;  %v499_v55 = vrot.slane %v490_v36, %v1506_v2  ;;  %v728_v31 = vld [vmem:[#allocation7 + $0x20] sm:$0xff] }
 0x2cf   :  { %v503_v54 = vrot.slane %v490_v36, %v1981_v24  ;;  %v1982_v2 = vsub.s32 3, %v1503_v1 }
 0x2d0   :  { %1302 = vrcp.f32 %v511_v30  ;;  %v1427_v30 = vmov 0.0|0.0  }
 0x2d1   :  { %1304 = vrcp.f32 %v495_v10  ;;  %v507_v60 = vrot.slane %v490_v36, %v1982_v2  ;;  %1225 = vmatprep.subr.bf16.mxu1 %v1427_v30  ;;  %1219 = vmatprep.subr.bf16.mxu0 %v1427_v30  ;;  %v742_v2 = vld [vmem:[#allocation7 + $0x90] sm:$0xff] }
 0x2d2   :  { %1306 = vrcp.f32 %v523_v63 }
 0x2d3   :  { %1308 = vrcp.f32 %v499_v55  ;;  %v730_v55 = vld [vmem:[#allocation7 + $0x30] sm:$0xff] }
 0x2d4   :  { %1310 = vrcp.f32 %v503_v54  ;;  %v734_v54 = vld [vmem:[#allocation7 + $0x50] sm:$0xff] }
 0x2d5   :  { %1312 = vrcp.f32 %v507_v60  ;;  %v743_v60 = vld [vmem:[#allocation7 + $0x98] sm:$0xff] }
 0x2da   :  { %v1303_v58 = vpop.eup %1302 }
 0x2db   :  { %v1305_v37 = vpop.eup %1304  ;;  %v545_v26 = vmul.f32 %v1303_v58, %v1761_v41 }
 0x2dc   :  { %v1307_v50 = vpop.eup %1306  ;;  %v533_v25 = vmul.f32 %v1305_v37, %v1716_v18  ;;  %v534_v38 = vmul.f32 %v1305_v37, %v1718_v20 }
 0x2dd   :  { %598 = vperm.xlu0 %1269, %v545_v26   ;;  %v554_v4 = vmul.f32 %v1307_v50, %v1747_v9  ;;  %v1309_v43 = vpop.eup %1308  ;;  %v1983_v9 = vsub.s32 5, %v1503_v1  ;;  %v733_v26 = vld [vmem:[#allocation7 + $0x48] sm:$0xff] }
 0x2de   :  { %558 = vperm.xlu1 %1268, %v533_v25   ;;  %v536_v41 = vmul.f32 %v1309_v43, %v1724_v57  ;;  %v537_v11 = vmul.f32 %v1309_v43, %v1730_v42  ;;  %v1311_v18 = vpop.eup %1310  ;;  %v1984_v57 = vsub.s32 6, %v1503_v1  ;;  %v735_v25 = vld [vmem:[#allocation7 + $0x58] sm:$0xff] }
 0x2df   :  { %v539_v44 = vmul.f32 %v1311_v18, %v1737_v47  ;;  %v515_v20 = vrot.slane %v490_v36, %v1983_v9  ;;  %v540_v15 = vmul.f32 %v1311_v18, %v1744_v48  ;;  %v1313_v56 = vpop.eup %1312  ;;  %v546_v47 = vmul.f32 %v1303_v58, %v1764_v19  ;;  %v731_v58 = vld [vmem:[#allocation7 + $0x38] sm:$0xff]  ;;  %v736_v18 = vld [vmem:[#allocation7 + $0x60] sm:$0xff] }
 0x2e0   :  { %v542_v52 = vmul.f32 %v1313_v56, %v1752_v0  ;;  %v519_v51 = vrot.slane %v490_v36, %v1984_v57  ;;  %v543_v42 = vmul.f32 %v1313_v56, %v1757_v12  ;;  %v724_v36 = vld [vmem:[#allocation7] sm:$0xff]  ;;  %v725_v12 = vld [vmem:[#allocation7 + $0x8] sm:$0xff]  ;;  %v1235_v37 = vpack.c.bf16 %v731_v58, %v730_v55  ;;  %v73_v9 = vld [vmem:[#allocation5] sm:$0xff] }
 0x2e1   :  { %628 = vperm.xlu0 %1269, %v554_v4   ;;  %1314 = vrcp.f32 %v515_v20  ;;  %v1226_v19 = vpack.c.bf16 %v725_v12, %v724_v36  ;;  %v740_v4 = vld [vmem:[#allocation7 + $0x80] sm:$0xff]  ;;  %v739_v56 = vld [vmem:[#allocation7 + $0x78] sm:$0xff]  ;;  %v1025_v57 = vadd.s32 4294967200, %v1607_v59 }
 0x2e2   :  { %563 = vperm.xlu1 %1268, %v534_v38   ;;  %1316 = vrcp.f32 %v519_v51  ;;  %v741_v38 = vld [vmem:[#allocation7 + $0x88] sm:$0xff]  ;;  %v1030_v51 = vadd.s32 4294967192, %v1607_v59 }
 0x2e3   :  { %1227 = vmatpush3.bf16.msra.mxu1 %v1226_v19  ;;  %v1220_v43 = vpack.c.bf16 %v741_v38, %v740_v4 }
 0x2e4   :  { %1228 = vmatprep.subr.bf16.mxu1 %v1427_v30 }
 0x2e5   :  { %1221 = vmatpush3.bf16.msra.mxu0 %v1220_v43 }
 0x2e6   :  { %568 = vperm.xlu1 %1268, %v536_v41   ;;  %v1241_v41 = vpack.c.bf16 %v735_v25, %v734_v54  ;;  %1222 = vmatprep.subr.bf16.mxu0 %v1427_v30 }
 0x2ea   :  { %573 = vperm.xlu1 %1268, %v537_v11   ;;  %v1223_v11 = vpack.c.bf16 %v743_v60, %v742_v2 }
 0x2eb   :  { %v1315_v16 = vpop.eup %1314 }
 0x2ec   :  { %v548_v29 = vmul.f32 %v1315_v16, %v1733_v62  ;;  %v549_v48 = vmul.f32 %v1315_v16, %v1767_v35  ;;  %v1317_v17 = vpop.eup %1316  ;;  %v555_v62 = vmul.f32 %v1307_v50, %v1773_v49  ;;  %v726_v35 = vld [vmem:[#allocation7 + $0x10] sm:$0xff]  ;;  %v732_v49 = vld [vmem:[#allocation7 + $0x40] sm:$0xff]  ;;  %v1429_v50 = vmov 0.0   ;;  %1224 = vmatpush3.bf16.msra.mxu0 %v1223_v11 }
 0x2ed   :  { %v551_v0 = vmul.f32 %v1317_v17, %v1740_v61  ;;  %v552_v32 = vmul.f32 %v1317_v17, %v1770_v53  ;;  %v727_v61 = vld [vmem:[#allocation7 + $0x18] sm:$0xff]  ;;  %v729_v53 = vld [vmem:[#allocation7 + $0x28] sm:$0xff]  ;;  %v1238_v24 = vpack.c.bf16 %v733_v26, %v732_v49  ;;  %1205 = vmatprep.mubr.msk.f32.mxu1 %vm1428_vm10, %v1429_v50  ;;  %1170 = vmatprep.mubr.msk.f32.mxu0 %vm1428_vm10, %v1429_v50 }
 0x2ee   :  { %578 = vperm.xlu1 %1268, %v539_v44   ;;  %v1229_v10 = vpack.c.bf16 %v727_v61, %v726_v35  ;;  %v1232_v63 = vpack.c.bf16 %v729_v53, %v728_v31  ;;  %v737_v44 = vld [vmem:[#allocation7 + $0x68] sm:$0xff]  ;;  %1249 = vmatprep.subr.bf16.mxu0 %v1427_v30  ;;  %v1860_v16 = vsub.s32 %v1030_v51, %v1503_v1 }
 0x2ef   :  { %v1244_v20 = vpack.c.bf16 %v737_v44, %v736_v18 }
 0x2f0   :  { %1230 = vmatpush3.bf16.msra.mxu1 %v1229_v10 }
 0x2f1   :  { %1231 = vmatprep.subr.bf16.mxu1 %v1427_v30 }
 0x2f2   :  { %583 = vperm.xlu1 %1268, %v540_v15   ;;  %v738_v15 = vld [vmem:[#allocation7 + $0x70] sm:$0xff] }
 0x2f4   :  { %1233 = vmatpush3.bf16.msra.mxu1 %v1232_v63 }
 0x2f5   :  { %1234 = vmatprep.subr.bf16.mxu1 %v1427_v30 }
 0x2f6   :  { %588 = vperm.xlu1 %1268, %v542_v52   ;;  %v1247_v52 = vpack.c.bf16 %v739_v56, %v738_v15 }
 0x2f8   :  { %1236 = vmatpush3.bf16.msra.mxu1 %v1235_v37 }
 0x2f9   :  { %1237 = vmatprep.subr.bf16.mxu1 %v1427_v30 }
 0x2fa   :  { %593 = vperm.xlu1 %1268, %v543_v42  }
 0x2fc   :  { %1239 = vmatpush3.bf16.msra.mxu1 %v1238_v24 }
 0x2fd   :  { %1240 = vmatprep.subr.bf16.mxu1 %v1427_v30 }
 0x2fe   :  { %603 = vperm.xlu1 %1268, %v546_v47   ;;  %v1857_v47 = vsub.s32 %v1025_v57, %v1503_v1 }
 0x300   :  { %1242 = vmatpush3.bf16.msra.mxu1 %v1241_v41 }
 0x301   :  { %1243 = vmatprep.subr.bf16.mxu1 %v1427_v30 }
 0x302   :  { %608 = vperm.xlu1 %1268, %v548_v29  }
 0x304   :  { %1245 = vmatpush3.bf16.msra.mxu1 %v1244_v20 }
 0x305   :  { %1246 = vmatprep.subr.bf16.mxu1 %v1427_v30 }
 0x306   :  { %613 = vperm.xlu1 %1268, %v549_v48  }
 0x308   :  { %1248 = vmatpush3.bf16.msra.mxu1 %v1247_v52 }
 0x30a   :  { %618 = vperm.xlu1 %1268, %v551_v0  }
 0x30b   :  { %1206 = vmatmul.mubr.f32.vlgmr.msra.gmra.mrb[0].mxu1 %v73_v9 }
 0x30e   :  { %623 = vperm.xlu1 %1268, %v552_v32  }
 0x312   :  { %633 = vperm.xlu1 %1268, %v555_v62  }
 0x316   :  { %914 = vrot.lane.b32.xlu1 %v73_v9, %s1430_s2 }
 0x35c   :  { %v599_v58 = vpop.permute.xlu0 %598 }
 0x35d   :  { %v559_v42 = vpop.permute.xlu1 %558  ;;  %v1067_v43 = vrot.slane %v599_v58, %v1857_v47 }
 0x35e   :  { %v1029_v48 = vrot.slane %v559_v42, %v1857_v47  ;;  %v636_v2 = vmul.f32 %v559_v42, %v1513_v5 }
 0x361   :  { %v564_v29 = vpop.permute.xlu1 %563 }
 0x362   :  { %v1034_v17 = vrot.slane %v564_v29, %v1860_v16  ;;  %v637_v54 = vmul.f32 %v564_v29, %v1520_v8 }
 0x364   :  { %v1036_v0 = vsel %vm1035_vm11, %v1034_v17, %v1029_v48  ;;  %v653_v44 = vsel %vm95_vm0, %v637_v54, 0.0 }
 0x365   :  { %v569_v32 = vpop.permute.xlu1 %568 }
 0x366   :  { %v1040_v12 = vrot.slane %v569_v32, %v1857_v47  ;;  %v638_v25 = vmul.f32 %v569_v32, %v1508_v3 }
 0x368   :  { %v661_v5 = vsel %vm95_vm0, %v638_v25, 0.0 }
 0x369   :  { %v574_v36 = vpop.permute.xlu1 %573 }
 0x36a   :  { %v1044_v59 = vrot.slane %v574_v36, %v1860_v16  ;;  %v639_v37 = vmul.f32 %v574_v36, %v1518_v7 }
 0x36c   :  { %v1045_v19 = vsel %vm1035_vm11, %v1044_v59, %v1040_v12  ;;  %v662_v11 = vsel %vm95_vm0, %v639_v37, 0.0 }
 0x36d   :  { %v1100_v62 = vsel %vm236_vm2, %v1045_v19, %v1036_v0  ;;  %v579_v1 = vpop.permute.xlu1 %578  ;;  %v663_v20 = vadd.f32 %v662_v11, %v661_v5 }
 0x36e   :  { %v1049_v61 = vrot.slane %v579_v1, %v1857_v47  ;;  %v640_v7 = vmul.f32 %v579_v1, %v1532_v14 }
 0x36f   :  { %v664_v0 = vrot.slane %v663_v20, 4 }
 0x370   :  { %v670_v15 = vsel %vm95_vm0, %v640_v7, 0.0 }
 0x371   :  { %v584_v35 = vpop.permute.xlu1 %583 }
 0x372   :  { %v1053_v10 = vrot.slane %v584_v35, %v1860_v16  ;;  %v641_v24 = vmul.f32 %v584_v35, %v1530_v13 }
 0x374   :  { %v1054_v31 = vsel %vm1035_vm11, %v1053_v10, %v1049_v61  ;;  %v671_v18 = vsel %vm95_vm0, %v641_v24, 0.0 }
 0x375   :  { %v1101_v53 = vsel %vm238_vm3, %v1054_v31, %v1100_v62  ;;  %v589_v63 = vpop.permute.xlu1 %588  ;;  %v672_v52 = vadd.f32 %v671_v18, %v670_v15 }
 0x376   :  { %v1058_v49 = vrot.slane %v589_v63, %v1857_v47  ;;  %v642_v13 = vmul.f32 %v589_v63, %v1544_v22 }
 0x377   :  { %v673_v36 = vrot.slane %v672_v52, 4 }
 0x378   :  { %v679_v57 = vsel %vm95_vm0, %v642_v13, 0.0 }
 0x379   :  { %v594_v55 = vpop.permute.xlu1 %593 }
 0x37a   :  { %v1062_v26 = vrot.slane %v594_v55, %v1860_v16  ;;  %v643_v4 = vmul.f32 %v594_v55, %v1542_v21  ;;  %v644_v21 = vmul.f32 %v599_v58, %v1554_v28  ;;  %v652_v28 = vsel %vm95_vm0, %v636_v2, 0.0 }
 0x37b   :  { %v654_v42 = vadd.f32 %v653_v44, %v652_v28  ;;  %v674_v58 = vadd.f32 %v673_v36, %v672_v52 }
 0x37c   :  { %v1063_v38 = vsel %vm1035_vm11, %v1062_v26, %v1058_v49  ;;  %v680_v14 = vsel %vm95_vm0, %v643_v4, 0.0  ;;  %v688_v51 = vsel %vm95_vm0, %v644_v21, 0.0  ;;  %v1909_v26 = vpop.permute.xlu0 %628 }
 0x37d   :  { %v1102_v60 = vsel %vm240_vm4, %v1063_v38, %v1101_v53  ;;  %v604_v41 = vpop.permute.xlu1 %603  ;;  %v681_v29 = vadd.f32 %v680_v14, %v679_v57  ;;  %v655_v62 = vrot.slane %v654_v42, 4  ;;  %v665_v53 = vadd.f32 %v664_v0, %v663_v20 }
 0x37e   :  { %v645_v8 = vmul.f32 %v604_v41, %v1552_v27  ;;  %v1071_v3 = vrot.slane %v604_v41, %v1860_v16  ;;  %v650_v41 = vmul.f32 %v1909_v26, %v1584_v46 }
 0x37f   :  { %v682_v1 = vrot.slane %v681_v29, 4  ;;  %v656_v37 = vadd.f32 %v655_v62, %v654_v42  ;;  %v666_v25 = vrot.slane %v665_v53, 2 }
 0x380   :  { %v1072_v9 = vsel %vm1035_vm11, %v1071_v3, %v1067_v43  ;;  %v689_v22 = vsel %vm95_vm0, %v645_v8, 0.0  ;;  %v675_v43 = vrot.slane %v674_v58, 2 }
 0x381   :  { %v1103_v27 = vsel %vm242_vm5, %v1072_v9, %v1102_v60  ;;  %v609_v56 = vpop.permute.xlu1 %608  ;;  %v690_v48 = vadd.f32 %v689_v22, %v688_v51  ;;  %v683_v49 = vadd.f32 %v682_v1, %v681_v29  ;;  %v657_v11 = vrot.slane %v656_v37, 2 }
 0x382   :  { %v646_v17 = vmul.f32 %v609_v56, %v1564_v34  ;;  %v1076_v12 = vrot.slane %v609_v56, %v1857_v47  ;;  %v667_v18 = vadd.f32 %v666_v25, %v665_v53  ;;  %v676_v9 = vadd.f32 %v675_v43, %v674_v58 }
 0x383   :  { %v691_v35 = vrot.slane %v690_v48, 4  ;;  %v684_v13 = vrot.slane %v683_v49, 2  ;;  %v658_v20 = vadd.f32 %v657_v11, %v656_v37 }
 0x384   :  { %v697_v61 = vsel %vm95_vm0, %v646_v17, 0.0  ;;  %v668_v52 = vrot.slane %v667_v18, 1  ;;  %v677_v29 = vrot.slane %v676_v9, 1 }
 0x385   :  { %v614_v32 = vpop.permute.xlu1 %613  ;;  %v692_v24 = vadd.f32 %v691_v35, %v690_v48  ;;  %v685_v15 = vadd.f32 %v684_v13, %v683_v49  ;;  %v659_v48 = vrot.slane %v658_v20, 1 }
 0x386   :  { %v647_v59 = vmul.f32 %v614_v32, %v1562_v33  ;;  %v1080_v19 = vrot.slane %v614_v32, %v1860_v16  ;;  %v678_v62 = vadd.f32 %v677_v29, %v676_v9 }
 0x387   :  { %v693_v8 = vrot.slane %v692_v24, 2  ;;  %v686_v17 = vrot.slane %v685_v15, 1  ;;  %v660_v1 = vadd.f32 %v659_v48, %v658_v20  ;;  %v934_v20 = vld [vmem:[#allocation7 + $0xa0] sm:$0xff]  ;;  %v1094_v48 = vrot.slane %v1909_v26, %v1857_v47 }
 0x388   :  { %v698_v10 = vsel %vm95_vm0, %v647_v59, 0.0  ;;  %v1081_v31 = vsel %vm1035_vm11, %v1080_v19, %v1076_v12  ;;  %v669_v12 = vadd.f32 %v668_v52, %v667_v18 }
 0x389   :  { %v699_v34 = vadd.f32 %v698_v10, %v697_v61  ;;  %v1104_v63 = vsel %vm244_vm6, %v1081_v31, %v1103_v27  ;;  %v619_v55 = vpop.permute.xlu1 %618  ;;  %v715_v27 = vsel %vm95_vm0, %v650_v41, 0.0  ;;  %v694_v56 = vadd.f32 %v693_v8, %v692_v24 }
 0x38a   :  { %v648_v54 = vmul.f32 %v619_v55, %v1574_v40  ;;  %v1085_v2 = vrot.slane %v619_v55, %v1857_v47  ;;  %v687_v35 = vadd.f32 %v686_v17, %v685_v15  ;;  %v752_v53 = vsel %vm236_vm2, %v669_v12, %v660_v1  ;;  %v935_v15 = vld [vmem:[#allocation7 + $0xa8] sm:$0xff] }
 0x38b   :  { %v700_v33 = vrot.slane %v699_v34, 4  ;;  %v695_v36 = vrot.slane %v694_v56, 1  ;;  %v753_v58 = vsel %vm238_vm3, %v678_v62, %v752_v53 }
 0x38c   :  { %v706_v3 = vsel %vm95_vm0, %v648_v54, 0.0  ;;  %v754_v49 = vsel %vm240_vm4, %v687_v35, %v753_v58 }
 0x38d   :  { %v701_v4 = vadd.f32 %v700_v33, %v699_v34  ;;  %v624_v38 = vpop.permute.xlu1 %623  ;;  %v696_v31 = vadd.f32 %v695_v36, %v694_v56  ;;  %v937_v56 = vld [vmem:[#allocation7 + $0xb8] sm:$0xff] }
 0x38e   :  { %v649_v7 = vmul.f32 %v624_v38, %v1572_v39  ;;  %v1089_v60 = vrot.slane %v624_v38, %v1860_v16 }
 0x38f   :  { %v702_v44 = vrot.slane %v701_v4, 2  ;;  %v755_v33 = vsel %vm242_vm5, %v696_v31, %v754_v49 }
 0x390   :  { %v707_v40 = vsel %vm95_vm0, %v649_v7, 0.0  ;;  %v1090_v21 = vsel %vm1035_vm11, %v1089_v60, %v1085_v2  ;;  %v1326_v2 = vld [vmem:[%s1973_s3] sm:$0x3]  ;;  %s1432_s3 = smov 32  }
 0x391   :  { %v708_v5 = vadd.f32 %v707_v40, %v706_v3  ;;  %v1920_v14 = vpop.permute.xlu1 %633  ;;  %v1923_v39 = vsel %vm246_vm7, %v1090_v21, %v1104_v63  ;;  %v703_v57 = vadd.f32 %v702_v44, %v701_v4  ;;  %v904_v7 = vrot.slane %v1326_v2, %v1683_v23 }
 0x392   :  { %v651_v46 = vmul.f32 %v1920_v14, %v1582_v45  ;;  %v1098_v29 = vrot.slane %v1920_v14, %v1860_v16 }
 0x393   :  { %v709_v22 = vrot.slane %v708_v5, 4  ;;  %v704_v45 = vrot.slane %v703_v57, 1 }
 0x394   :  { %v716_v28 = vsel %vm95_vm0, %v651_v46, 0.0 }
 0x395   :  { %v710_v51 = vadd.f32 %v709_v22, %v708_v5  ;;  %v717_v42 = vadd.f32 %v716_v28, %v715_v27  ;;  %v705_v34 = vadd.f32 %v704_v45, %v703_v57  ;;  %v915_v23 = vpop.permute.xlu1 %914  ;;  %v936_v22 = vld [vmem:[#allocation7 + $0xb0] sm:$0xff]  ;;  %v1250_v27 = vpack.c.bf16 %v935_v15, %v934_v20 }
 0x396   :  { %v1253_v28 = vpack.c.bf16 %v937_v56, %v936_v22 }
 0x397   :  { %v711_v0 = vrot.slane %v710_v51, 2  ;;  %v718_v32 = vrot.slane %v717_v42, 4  ;;  %v756_v54 = vsel %vm244_vm6, %v705_v34, %v755_v33 }
 0x399   :  { %v712_v59 = vadd.f32 %v711_v0, %v710_v51  ;;  %v719_v19 = vadd.f32 %v718_v32, %v717_v42  ;;  %v1099_v0 = vsel %vm1035_vm11, %v1098_v29, %v1094_v48 }
 0x39a   :  { %v1106_v16 = vsel %vm248_vm8, %v1099_v0, %v1923_v39 }
 0x39b   :  { %v713_v61 = vrot.slane %v712_v59, 1  ;;  %v720_v10 = vrot.slane %v719_v19, 2 }
 0x39d   :  { %v721_v63 = vadd.f32 %v720_v10, %v719_v19  ;;  %v714_v55 = vadd.f32 %v713_v61, %v712_v59 }
 0x39f   :  { %v722_v37 = vrot.slane %v721_v63, 1  ;;  %v757_v25 = vsel %vm246_vm7, %v714_v55, %v756_v54 }
 0x3a1   :  { %v723_v24 = vadd.f32 %v722_v37, %v721_v63 }
 0x3a3   :  { %v758_v4 = vsel %vm248_vm8, %v723_v24, %v757_v25 }
 0x3a4   :  { %1171 = vmatmul.mubr.msk.f32.vlgmr.msra.gmra.mrb[0].mxu0 %vm95_vm0, %v758_v4 }
 0x3a5   :  { %1216 = vmatprep.mubr.msk.f32.mxu0 %vm1428_vm10, %v1429_v50  ;;  %1251 = vmatpush3.bf16.msra.mxu0 %v1250_v27 }
 0x3a6   :  { %1252 = vmatprep.subr.bf16.mxu0 %v1427_v30 }
 0x3a9   :  { %1254 = vmatpush3.bf16.msra.mxu0 %v1253_v28 }
 0x3de   :  { %v897_v38 = vpop.f32.mrb[0].mxu1 }
 0x3df   :  { %v1207_v43 = vpop.f32.mrb[1].mxu1 }
 0x477   :  { %v827_v60 = vpop.f32.mrb[0].mxu0 }
 0x478   :  { %v898_v41 = vadd.f32 %v897_v38, %v827_v60  ;;  %v1172_v11 = vpop.f32.mrb[1].mxu0 }
 0x47a   :  { %v905_v13 = vadd.f32 %v904_v7, %v898_v41 }
 0x47c   :  { %1318 = vtanh.f32 %v905_v13  ;;  %v1133_v3 = vmul.f32 -1.442695, %v905_v13 }
 0x47e   :  { %1320 = vpow2.f32 %v1133_v3 }
 0x486   :  { %v1319_v8 = vpop.eup %1318 }
 0x487   :  { %919 = vrot.lane.b32.xlu0 %v1319_v8, %s1431_s29 }
 0x488   :  { %v1321_v50 = vpop.eup %1320 }
 0x489   :  { %v909_v40 = vadd.f32 1.0, %v1321_v50 }
 0x48b   :  { %1322 = vrcp.f32 %v909_v40 }
 0x495   :  { %v1323_v21 = vpop.eup %1322 }
 0x496   :  { %v917_v5 = vmul.f32 %v1323_v21, %v915_v23 }
 0x4f9   :  { %v920_v18 = vpop.permute.xlu0 %919 }
 0x4fa   :  { %v922_v44 = vmul.f32 %v1323_v21, %v920_v18 }
 0x4fc   :  { %924 = vrot.lane.b32.xlu0 %v922_v44, %s1432_s3 }
 0x56e   :  { %v925_v9 = vpop.permute.xlu0 %924 }
 0x56f   :  { %v927_v46 = vadd.f32 %v925_v9, %v917_v5 }
 0x571   :  { %1324 = vtanh.f32 %v927_v46 }
 0x57b   :  { %v1325_v52 = vpop.eup %1324 }
 0x57c   :  { %930 = vrot.lane.b32.xlu1 %v1325_v52, %s1431_s29 }
 0x580   :  { %1014 = vrot.lane.b32.xlu1 %v1516_v6, %s1430_s2 }
 0x584   :  { %1022 = vrot.lane.b32.xlu1 %v927_v46, %s1432_s3 }
 0x5ee   :  { %v931_v57 = vpop.permute.xlu1 %930 }
 0x5ef   :  { %v933_v51 = vmul.f32 %v1323_v21, %v931_v57 }
 0x5f1   :  { %939 = vrot.lane.b32.xlu0 %v933_v51, %s1432_s3 }
 0x5f2   :  { %v1015_v30 = vpop.permute.xlu1 %1014 }
 0x5f5   :  { %1018 = vrot.lane.b32.xlu0 %v933_v51, %s1431_s29 }
 0x5f6   :  { %v1023_v12 = vpop.permute.xlu1 %1022 }
 0x663   :  { %v940_v42 = vpop.permute.xlu0 %939 }
 0x664   :  { %1217 = vmatmul.mubr.msk.f32.vlgmr.msra.gmra.mrb[2].mxu0 %vm95_vm0, %v940_v42 }
 0x667   :  { %v1019_v36 = vpop.permute.xlu0 %1018 }
 0x737   :  { %v1009_v17 = vpop.f32.mrb[2].mxu0 }
 0x738   :  { %v1017_v6 = vadd.f32 %v1015_v30, %v1009_v17  ;;  %v1218_v32 = vpop.f32.mrb[3].mxu0 }
 0x73a   :  { %v1108_v45 = vsel %vm95_vm0, %v1017_v6, %v1019_v36 }
 0x73b   :  { %v1110_v14 = vsel %vm1109_vm12, %v1108_v45, %v1023_v12 }
 0x73c   :  { %v1112_v59 = vsel %vm1111_vm13, %v1110_v14, %v1106_v16 }
 0x73d   :  { %v1114_v47 = vsel %vm1113_vm14, %v1112_v59, 0.0 }
 0x73e   :  { %1115 = vst [vmem:[#allocation8] sm:$0xff] %v1114_v47 }
 0x73f   :  { %1404 = shalt.err (!%p1401_p0)
}
 0x740   :  { %s1405_s9 = scalar_lea.hbm %s1974_s4, 128 }
 0x741   :  { %p1406_p1 = scmp.ne.s32.totalorder %s1974_s4, %s1405_s9  ;;  %p1409_p2 = scmp.lt.u32.totalorder %s1405_s9, %s1974_s4 }
 0x743   :  { %p1411_p3 = pnand %p1409_p2, %p1406_p1 }
 0x745   :  { %1414 = shalt.err (!%p1411_p3)
}
 0x746   :  { %1125 = dma.vmem_to_hbm [thread:$0]  %s1123_s5, 128, %s1974_s4, [#allocation4]  }
 0x747   :  { %1419 = dma.done.wait [#allocation4], 128  }
 0x748   :  { %1420 = vsyncadd [#allocation4], 4294967168 }
 0x749   :  { %1129 = vsyncpa [#allocation3], 1 }
 0x74a   :  { %1130 = vsyncpa [#allocation6], 1 }
 0x74b   :  { %1131 = vsyncpa [#allocation4], 1 }

</bundles_post_ra>
